<compile_context>
chip_gen: v5e
topology: v5e:2x2
jax: 0.10.0
libtpu: 0.0.40
codegen_flags: <defaults>
</compile_context>

<pallas_src>
from typing import NamedTuple

import jax
import jax.numpy as jnp
from jax.experimental import pallas as pl
from jax.experimental.pallas import tpu as pltpu


def _round_up(x, m):
    return ((x + m - 1) // m) * m


def _choose_k_tiling(hidden_dim, tk_max=512):
    """Pick (tk, Hp).  If H fits in one block, use the full dim (no padding)."""
    if hidden_dim <= tk_max:
        return hidden_dim, hidden_dim
    tk = tk_max                      # multiple of 128
    return tk, _round_up(hidden_dim, tk)


class ClassifierParams(NamedTuple):
    wt: jax.Array        # (Hp, Cp) transposed, zero-padded weight (MXU-native RHS)
    b: jax.Array         # (1, Cp)  zero-padded bias row
    hidden_dim: int      # H (unpadded)
    num_class: int       # C (unpadded)
    tk: int              # K tile chosen at prep time


def prepare_classifier_params(w, b, *, tk_max=512, param_dtype=None):
    """One-time prep of the static nn.Linear parameters (do NOT call per step).

    w: (num_class, hidden_dim)  -- PyTorch nn.Linear layout
    b: (num_class,)
    """
    C, H = w.shape
    assert b.shape == (C,)
    tk, Hp = _choose_k_tiling(H, tk_max)
    Cp = _round_up(C, 128)                       # lane-dense output columns
    wt = jnp.pad(w.T, ((0, Hp - H), (0, Cp - C)))  # zero rows/cols are inert
    bp = jnp.pad(b, (0, Cp - C)).reshape(1, Cp)
    if param_dtype is not None:
        wt = wt.astype(param_dtype)              # e.g. bf16 weights, half the DMA
    return ClassifierParams(wt, bp, H, C, tk)


def _linear_kernel(z_ref, wt_ref, b_ref, o_ref, acc_ref):
    """One (tm, tn) output tile; grid axis 2 (K) is the reduction."""
    k = pl.program_id(2)

    @pl.when(k == 0)
    def _():
        acc_ref[...] = jnp.zeros_like(acc_ref)

    # z tile (tm, tk) @ w^T tile (tk, tn): MXU-native, f32 accumulation.
    acc_ref[...] += jnp.dot(z_ref[...], wt_ref[...],
                            preferred_element_type=jnp.float32)

    @pl.when(k == pl.num_programs(2) - 1)
    def _():
        o_ref[...] = (acc_ref[...]
                      + b_ref[...].astype(jnp.float32)).astype(o_ref.dtype)


def classifier_forward(z, params: ClassifierParams, *, tm=512, tn=1024):
    """z: (B, H) -> (B, num_class).  params from prepare_classifier_params."""
    B, H = z.shape
    assert H == params.hidden_dim
    Hp, Cp = params.wt.shape
    tk = params.tk
    C = params.num_class

    # Zero-pad the reduction axis only (load-bearing for correctness).
    if Hp != H:
        z = jnp.pad(z, ((0, 0), (0, Hp - H)))

    # Clamp tiles to the problem, keeping (8, 128) alignment.
    tm = max(8, min(tm, _round_up(B, 8)))
    tn = max(128, min(tn, Cp))

    # v7x has 2 TensorCores: make sure a 'parallel' axis has >= 2 blocks.
    if pl.cdiv(B, tm) == 1 and pl.cdiv(Cp, tn) == 1 and tn >= 256:
        tn //= 2

    out_dtype = z.dtype
    zb = z.dtype.itemsize
    wb = params.wt.dtype.itemsize
    bb = params.b.dtype.itemsize
    ob = jnp.dtype(out_dtype).itemsize

    # Per-generation VMEM budget (v7x: 64 MiB physical; v5e/v6e: 128 MiB).
    try:
        vmem_phys = int(pltpu.get_tpu_info().vmem_capacity_bytes)
    except Exception:
        vmem_phys = 64 * 1024 * 1024
    vmem_cap = (vmem_phys * 3) // 4              # leave compiler headroom

    def vmem_est(tm_, tn_):
        # double-buffered z / wT / bias / out tiles + the f32 accumulator
        return (2 * (tm_ * tk * zb + tk * tn_ * wb + tn_ * bb + tm_ * tn_ * ob)
                + tm_ * tn_ * 4)

    while vmem_est(tm, tn) > vmem_cap and tn > 128:
        tn //= 2
    while vmem_est(tm, tn) > vmem_cap and tm > 8:
        tm //= 2

    grid = (pl.cdiv(B, tm), pl.cdiv(Cp, tn), Hp // tk)

    vmem_limit = int(min(max(2 * vmem_est(tm, tn), 16 * 1024 * 1024), vmem_cap))

    # Advisory cost, including operand re-streaming across the grid.
    cost = pl.CostEstimate(
        flops=2 * B * Hp * Cp,
        transcendentals=0,
        bytes_accessed=int(grid[0] * Cp * Hp * wb      # weight re-read per M block
                           + grid[1] * B * Hp * zb     # activation re-read per N block
                           + B * Cp * ob + Cp * bb))

    out_p = pl.pallas_call(
        _linear_kernel,
        out_shape=jax.ShapeDtypeStruct((B, Cp), out_dtype),
        grid_spec=pltpu.PrefetchScalarGridSpec(
            num_scalar_prefetch=0,
            grid=grid,
            in_specs=[
                pl.BlockSpec((tm, tk), lambda i, j, k: (i, k)),   # z    (B,  Hp)
                pl.BlockSpec((tk, tn), lambda i, j, k: (k, j)),   # w^T  (Hp, Cp)
                pl.BlockSpec((1, tn), lambda i, j, k: (0, j)),    # bias (1,  Cp)
            ],
            out_specs=pl.BlockSpec((tm, tn), lambda i, j, k: (i, j)),
            scratch_shapes=[pltpu.VMEM((tm, tn), jnp.float32)],
        ),
        compiler_params=pltpu.CompilerParams(
            dimension_semantics=("parallel", "parallel", "arbitrary"),
            vmem_limit_bytes=vmem_limit),
        cost_estimate=cost,
    )(z, params.wt, params.b)

    return out_p[:, :C]


if __name__ == "__main__":
    # Small shapes consistent with the module: batch=8, hidden_dim=32, num_class=10
    batch, hidden_dim, num_class = 8, 32, 10

    key = jax.random.PRNGKey(0)
    kz, kw, kb = jax.random.split(key, 3)

    z = jax.random.normal(kz, (batch, hidden_dim), dtype=jnp.float32)
    # Deterministic parameter init (Kaiming-uniform-like bound, as in nn.Linear)
    bound = 1.0 / (hidden_dim ** 0.5)
    w = jax.random.uniform(kw, (num_class, hidden_dim),
                           minval=-bound, maxval=bound, dtype=jnp.float32)
    b = jax.random.uniform(kb, (num_class,),
                           minval=-bound, maxval=bound, dtype=jnp.float32)

    # One-time static-parameter prep (transpose + pad happen here, not per call).
    # For a bf16 MXU path pass param_dtype=jnp.bfloat16 and feed bf16 activations.
    params = prepare_classifier_params(w, b)

    out = classifier_forward(z, params)
    jax.block_until_ready(out)

    # Reference check against plain JAX (same semantics as torch nn.Linear).
    ref = z @ w.T + b
    assert out.shape == (batch, num_class)
    assert jnp.allclose(out, ref, atol=1e-4, rtol=1e-4)

    print("KERNEL_OK")
</pallas_src>

<mosaic_0001>
module attributes {stable_mosaic.version = 11 : i64} {
  func.func @_linear_kernel(%arg0: i32, %arg1: i32, %arg2: i32, %arg3: memref<8x32xf32, #tpu.memory_space<vmem>>, %arg4: memref<32x128xf32, #tpu.memory_space<vmem>>, %arg5: memref<1x128xf32, #tpu.memory_space<vmem>>, %arg6: memref<8x128xf32, #tpu.memory_space<vmem>>, %arg7: memref<8x128xf32, #tpu.memory_space<vmem>>) attributes {dimension_semantics = [#tpu.dimension_semantics<parallel>, #tpu.dimension_semantics<parallel>, #tpu.dimension_semantics<arbitrary>], iteration_bounds = array<i64: 1, 1, 1>, scalar_prefetch = 0 : i64, scratch_operands = 1 : i64, tpu.core_type = #tpu.core_type<tc>, window_params = [{transform_indices = @transform_0, window_bounds = array<i64: 8, 32>}, {transform_indices = @transform_1, window_bounds = array<i64: 32, 128>}, {transform_indices = @transform_2, window_bounds = array<i64: 1, 128>}, {transform_indices = @transform_3, window_bounds = array<i64: 8, 128>}]} {
    %c0_i32 = arith.constant 0 : i32
    %0 = arith.cmpi eq, %arg2, %c0_i32 : i32
    %1 = arith.extui %0 : i1 to i32
    %c0_i32_0 = arith.constant 0 : i32
    %2 = arith.cmpi ne, %1, %c0_i32_0 : i32
    scf.if %2 {
      %cst_10 = arith.constant 0.000000e+00 : f32
      %12 = vector.broadcast %cst_10 : f32 to vector<8x128xf32>
      %c0_11 = arith.constant 0 : index
      %c0_12 = arith.constant 0 : index
      %13 = vector.load %arg7[%c0_11, %c0_12] : memref<8x128xf32, #tpu.memory_space<vmem>>, vector<8x128xf32>
      tpu.vector_store %arg7[%c0_11, %c0_12], %12 {strides = array<i32>} : memref<8x128xf32, #tpu.memory_space<vmem>>, vector<8x128xf32>,
    } else {
    }
    %c0 = arith.constant 0 : index
    %c0_1 = arith.constant 0 : index
    %3 = vector.load %arg7[%c0, %c0_1] : memref<8x128xf32, #tpu.memory_space<vmem>>, vector<8x128xf32>
    %c0_2 = arith.constant 0 : index
    %c0_3 = arith.constant 0 : index
    %4 = vector.load %arg3[%c0_2, %c0_3] : memref<8x32xf32, #tpu.memory_space<vmem>>, vector<8x32xf32>
    %c0_4 = arith.constant 0 : index
    %c0_5 = arith.constant 0 : index
    %5 = vector.load %arg4[%c0_4, %c0_5] : memref<32x128xf32, #tpu.memory_space<vmem>>, vector<32x128xf32>
    %cst = arith.constant dense<0.000000e+00> : vector<8x128xf32>
    %6 = tpu.matmul %4, %5, %cst {dimension_numbers = #tpu.dot_dimension_numbers<[1], [0], [0], [1], [0, 0, 1, 1], [], []>} : vector<8x32xf32>, vector<32x128xf32>, vector<8x128xf32> -> vector<8x128xf32>
    %7 = arith.addf %3, %6 : vector<8x128xf32>
    %c0_6 = arith.constant 0 : index
    %c0_7 = arith.constant 0 : index
    %8 = vector.load %arg7[%c0_6, %c0_7] : memref<8x128xf32, #tpu.memory_space<vmem>>, vector<8x128xf32>
    tpu.vector_store %arg7[%c0_6, %c0_7], %7 {strides = array<i32>} : memref<8x128xf32, #tpu.memory_space<vmem>>, vector<8x128xf32>,
    %c0_i32_8 = arith.constant 0 : i32
    %9 = arith.cmpi eq, %arg2, %c0_i32_8 : i32
    %10 = arith.extui %9 : i1 to i32
    %c0_i32_9 = arith.constant 0 : i32
    %11 = arith.cmpi ne, %10, %c0_i32_9 : i32
    scf.if %11 {
      %c0_10 = arith.constant 0 : index
      %c0_11 = arith.constant 0 : index
      %12 = vector.load %arg7[%c0_10, %c0_11] : memref<8x128xf32, #tpu.memory_space<vmem>>, vector<8x128xf32>
      %c0_12 = arith.constant 0 : index
      %c0_13 = arith.constant 0 : index
      %13 = vector.load %arg5[%c0_12, %c0_13] : memref<1x128xf32, #tpu.memory_space<vmem>>, vector<1x128xf32>
      %14 = vector.broadcast %13 : vector<1x128xf32> to vector<8x128xf32>
      %15 = arith.addf %12, %14 : vector<8x128xf32>
      %c0_14 = arith.constant 0 : index
      %c0_15 = arith.constant 0 : index
      %16 = vector.load %arg6[%c0_14, %c0_15] : memref<8x128xf32, #tpu.memory_space<vmem>>, vector<8x128xf32>
      tpu.vector_store %arg6[%c0_14, %c0_15], %15 {strides = array<i32>} : memref<8x128xf32, #tpu.memory_space<vmem>>, vector<8x128xf32>,
    } else {
    }
    return
  }
  func.func @transform_0(%arg0: i32, %arg1: i32, %arg2: i32) -> (i32, i32) {
    %c0_i32 = arith.constant 0 : i32
    return %arg0, %arg2 : i32, i32
  }
  func.func @transform_1(%arg0: i32, %arg1: i32, %arg2: i32) -> (i32, i32) {
    %c0_i32 = arith.constant 0 : i32
    return %arg2, %arg1 : i32, i32
  }
  func.func @transform_2(%arg0: i32, %arg1: i32, %arg2: i32) -> (i32, i32) {
    %c0_i32 = arith.constant 0 : i32
    %c0_i32_0 = arith.constant 0 : i32
    return %c0_i32, %arg1 : i32, i32
  }
  func.func @transform_3(%arg0: i32, %arg1: i32, %arg2: i32) -> (i32, i32) {
    %c0_i32 = arith.constant 0 : i32
    return %arg0, %arg1 : i32, i32
  }
}

</mosaic_0001>

<bundles_post_ra>
// kernel: tpu_custom_call.1
= control target key start
LH: loop header
LB: loop body
LE: loop exit
PB: predicated region body
PF: predicated region fallthrough
CT: control target
= control target key end

     0   :  { %8 = vsyncpa [#allocation4], 0  ;;  %s232_s0 = inlined_call_operand.hbm [shape: f32[8,32], index: 0, kind: input, shape index: {}]   ;;  %s233_s1 = inlined_call_operand.hbm [shape: f32[32,128], index: 1, kind: input, shape index: {}]   ;;  %s234_s2 = inlined_call_operand.vmem [shape: f32[1,128], index: 2, kind: input, shape index: {}]   ;;  %s235_s3 = inlined_call_operand.hbm [shape: f32[8,128], index: 3, kind: output, shape index: {}]  }
   0x1   :  { %9 = vsyncpa [#allocation7], 0 }
   0x2   :  { %10 = vsyncpa [#allocation5], 0  ;;  %s16_s14 = sshll.u32 %s232_s0, 4  ;;  %s195_s15 = smov [#allocation3]   ;;  %s17_s14 = int_to_ptr.hbm [resolvable:$true] %s16_s14 }
   0x3   :  { %s18_s16 = sshll.u32 %s195_s15, 4  ;;  %s26_s19 = sshll.u32 %s233_s1, 4  ;;  %s19_s16 = int_to_ptr.vmem [resolvable:$true] %s18_s16  ;;  %s27_s19 = int_to_ptr.hbm [resolvable:$true] %s26_s19 }
   0x4   :  { %21 = dma.hbm_to_vmem [thread:$0]  %s17_s14, 128, %s19_s16, [#allocation4]  }
   0x5   :  { %s196_s20 = smov [#allocation6]   ;;  %s197_s22 = smov 128  }
   0x6   :  { %s28_s21 = sshll.u32 %s196_s20, 4  ;;  %s198_s23 = smov 8   ;;  %s29_s21 = int_to_ptr.vmem [resolvable:$true] %s28_s21 }
   0x7   :  { %34 = dma.hbm_to_vmem [thread:$0]  %s27_s19, 512, %s29_s21, [#allocation7], %s197_s22, %s197_s22, %s198_s23  }
   0x8   :  { %189 = dma.done.wait [#allocation4], 128  }
   0x9   :  { %190 = vsyncadd [#allocation4], 4294967168 }
   0xa   :  { %191 = dma.done.wait [#allocation7], 512  }
   0xb   :  { %192 = vsyncadd [#allocation7], 4294966784  ;;  %v55_v0 = vld [vmem:[#allocation6 + $0x18] sm:$0xff]  ;;  %v54_v1 = vld [vmem:[#allocation6 + $0x10] sm:$0xff]  ;;  %vm56_vm0 = vcmask 261120   ;;  %s199_s24 = smov [#allocation8]  }
   0xc   :  { %72 = vmatpush.msra.mxu0 %v55_v0  ;;  %v53_v2 = vld [vmem:[#allocation6 + $0x8] sm:$0xff]  ;;  %v52_v3 = vld [vmem:[#allocation6] sm:$0xff]  ;;  %v51_v4 = vld [vmem:[#allocation3] sm:$0xff]  ;;  %s97_s25 = sshll.u32 %s199_s24, 4  ;;  %s99_s28 = sshll.u32 %s235_s3, 4  ;;  %s98_s25 = int_to_ptr.vmem [resolvable:$true] %s97_s25  ;;  %s100_s28 = int_to_ptr.hbm [resolvable:$true] %s99_s28 }
   0xd   :  { %v116_v5 = vld [vmem:[%s234_s2] ss:$0 sm:$0xff] }
   0xe   :  { %73 = vmatpush.msra.mxu0 %v54_v1 }
  0x10   :  { %74 = vmatpush.msra.mxu0 %v53_v2 }
  0x12   :  { %75 = vmatpush.msra.mxu0 %v52_v3 }
  0x13   :  { %110 = vmatmul.msk.f32.vlgmr.msra.gmra.mxu0 %vm56_vm0, %v51_v4 }
  0x90   :  { %v77_v6 = vpop.f32.mrf.mxu0 }
  0x91   :  { %v90_v7 = vadd.f32 %v116_v5, %v77_v6 }
  0x93   :  { %91 = vst [vmem:[#allocation8] sm:$0xff] %v90_v7 }
  0x94   :  { %102 = dma.vmem_to_hbm [thread:$0]  %s98_s25, 128, %s100_s28, [#allocation5]  }
  0x95   :  { %193 = dma.done.wait [#allocation5], 128  }
  0x96   :  { %194 = vsyncadd [#allocation5], 4294967168 }
  0x97   :  { %107 = vsyncpa [#allocation4], 1 }
  0x98   :  { %108 = vsyncpa [#allocation7], 1 }
  0x99   :  { %109 = vsyncpa [#allocation5], 1 }

</bundles_post_ra>
